<compile_context>
chip_gen: v6e
topology: v6e:2x2x1
jax: 0.10.0
libtpu: 0.0.40
codegen_flags: <defaults>
</compile_context>

<pallas_src>
import functools

import jax
import jax.numpy as jnp
import numpy as np
from jax.experimental import pallas as pl
from jax.experimental.pallas import tpu as pltpu

_NEG_LOGIT = -1e9      # pad value for extra class columns (exp underflows to 0)
_PAD_BOX = 0.25        # dummy valid box for padded rows/columns (sliced off later)
_EPS = 1e-12           # guard against 0 union / enclosing area


def _round_up(x, m):
    return ((x + m - 1) // m) * m


def _recip(x):
    """EUP approximate reciprocal + one Newton step (~full f32 precision)."""
    r = pl.reciprocal(x, approx=True)
    return r * (2.0 - x * r)


def _cost_kernel(ids_ref, logits_ref, obox_ref, tbox_ref, c_ref,
                 *, w_class, w_bbox, w_giou, nc_pad):
    t_pad = ids_ref.shape[-1]

    # ---- one-hot built in-kernel, pre-scaled by -w_class (VPU, no HBM) ----
    ids = ids_ref[...]                                          # (1, Tpad) int32
    cls_iota = jax.lax.broadcasted_iota(jnp.int32, (nc_pad, t_pad), 0)
    onehot = jnp.where(cls_iota == ids,
                       jnp.float32(-w_class), jnp.float32(0.0))  # (Cpad, Tpad)

    # ---- softmax numerator/denominator; normalization deferred to (R, T) ----
    logits = logits_ref[...]                                     # (R, Cpad)
    m = jnp.max(logits, axis=-1, keepdims=True)
    e = jnp.exp(logits - m)
    inv_s = pl.reciprocal(jnp.sum(e, axis=-1, keepdims=True), approx=False)  # (R,1)

    # ---- class term = -w_class * e[:, tgt] / sum(e)  (one-hot gather on MXU) ----
    num = jnp.dot(e, onehot, preferred_element_type=jnp.float32)  # (R, Tpad)

    # ---- box components, broadcast (R,1) vs (1,Tpad) ----
    ocx = obox_ref[:, 0:1]
    ocy = obox_ref[:, 1:2]
    ow = obox_ref[:, 2:3]
    oh = obox_ref[:, 3:4]
    tcx = tbox_ref[0:1, :]
    tcy = tbox_ref[1:2, :]
    tw = tbox_ref[2:3, :]
    th = tbox_ref[3:4, :]

    # ---- cost_bbox = cdist(out_bbox, tgt_bbox, p=1) ----
    cost_bbox = (jnp.abs(ocx - tcx) + jnp.abs(ocy - tcy)
                 + jnp.abs(ow - tw) + jnp.abs(oh - th))          # (R, Tpad)

    # ---- cxcywh -> xyxy ----
    ox1 = ocx - 0.5 * ow
    oy1 = ocy - 0.5 * oh
    ox2 = ocx + 0.5 * ow
    oy2 = ocy + 0.5 * oh
    tx1 = tcx - 0.5 * tw
    ty1 = tcy - 0.5 * th
    tx2 = tcx + 0.5 * tw
    ty2 = tcy + 0.5 * th

    area_o = ow * oh                                             # (R, 1)
    area_t = tw * th                                             # (1, Tpad)

    # shared pairwise extrema (used by both intersection and enclosing box)
    lt_x = jnp.maximum(ox1, tx1)
    lt_y = jnp.maximum(oy1, ty1)
    rb_x = jnp.minimum(ox2, tx2)
    rb_y = jnp.minimum(oy2, ty2)
    el_x = jnp.minimum(ox1, tx1)
    el_y = jnp.minimum(oy1, ty1)
    er_x = jnp.maximum(ox2, tx2)
    er_y = jnp.maximum(oy2, ty2)

    inter = jnp.maximum(rb_x - lt_x, 0.0) * jnp.maximum(rb_y - lt_y, 0.0)
    union = area_o + area_t - inter
    iou = inter * _recip(jnp.maximum(union, _EPS))

    earea = jnp.maximum(er_x - el_x, 0.0) * jnp.maximum(er_y - el_y, 0.0)
    giou = iou - (earea - union) * _recip(jnp.maximum(earea, _EPS))

    # ---- fused accumulation (weights folded, no full-tile cost temporaries) ----
    acc = w_bbox * cost_bbox
    acc = acc + num * inv_s            # class term (already carries -w_class)
    acc = acc - w_giou * giou
    c_ref[...] = acc.astype(c_ref.dtype)


def compute_cost_matrix(pred_logits, pred_boxes, targets_labels, targets_boxes,
                        *, cost_class=1.0, cost_bbox=1.0, cost_giou=1.0):
    """Per-image cost matrices, padded: returns C of shape [bs, nq_pad, T_pad].

    Only column j < len(targets_boxes[b]) and row q < nq are meaningful for
    image b (the rest is padding to keep lanes/sublanes dense).
    """
    bs, nq, nc = pred_logits.shape
    sizes = [int(b.shape[0]) for b in targets_boxes]
    t_max = max(sizes) if sizes else 0

    # --- padded geometry: lane-dense (128) targets & classes, >=8 sublanes ---
    T_pad = _round_up(max(t_max, 1), 128)
    nc_pad = _round_up(nc, 128)

    # row tiling: cap at 512; guarantee >=2 grid steps for megacore (v7x)
    tile_rows = min(_round_up(nq, 8), 512)
    if bs * ((nq + tile_rows - 1) // tile_rows) < 2:
        tile_rows = max(8, _round_up((nq + 1) // 2, 8))
    nq_pad = _round_up(nq, tile_rows)

    # --- predictions: pad query rows (value irrelevant) and class cols (-1e9) ---
    logits = jnp.pad(pred_logits.astype(jnp.float32),
                     ((0, 0), (0, nq_pad - nq), (0, nc_pad - nc)),
                     constant_values=_NEG_LOGIT)                 # (bs, nq_pad, nc_pad)
    obox = jnp.pad(pred_boxes.astype(jnp.float32),
                   ((0, 0), (0, nq_pad - nq), (0, 0)),
                   constant_values=_PAD_BOX)                     # (bs, nq_pad, 4)

    # --- per-image targets: padded ids (-1 => all-zero one-hot column) & dummy boxes ---
    ids_list, tbox_list = [], []
    for lbl, box in zip(targets_labels, targets_boxes):
        t = int(box.shape[0])
        ids_list.append(jnp.pad(lbl.astype(jnp.int32), (0, T_pad - t),
                                constant_values=-1))
        tbox_list.append(
            jnp.pad(box.astype(jnp.float32), ((0, T_pad - t), (0, 0)),
                    constant_values=_PAD_BOX).T)
    ids = jnp.stack(ids_list)[:, None, :]                        # (bs, 1, T_pad) int32
    tbox = jnp.stack(tbox_list)                                  # (bs, 4, T_pad)

    kernel = functools.partial(_cost_kernel,
                               w_class=float(cost_class),
                               w_bbox=float(cost_bbox),
                               w_giou=float(cost_giou),
                               nc_pad=nc_pad)

    grid = (bs, nq_pad // tile_rows)

    # explicit VMEM budget: 2x double-buffered blocks + elementwise-temp headroom,
    # capped at 40 MiB so v7x (64 MiB physical) keeps room for Mosaic scratch.
    block_bytes = 4 * (tile_rows * nc_pad + tile_rows * 4 + 4 * T_pad
                       + T_pad + tile_rows * T_pad)
    temp_bytes = 4 * (8 * tile_rows * T_pad + nc_pad * T_pad
                      + 2 * tile_rows * nc_pad)
    vmem_limit = int(min(40 * 1024 * 1024,
                         max(16 * 1024 * 1024, 2 * block_bytes + temp_bytes)))

    c_padded = pl.pallas_call(
        kernel,
        out_shape=jax.ShapeDtypeStruct((bs, nq_pad, T_pad), jnp.float32),
        grid_spec=pltpu.PrefetchScalarGridSpec(
            num_scalar_prefetch=0,
            grid=grid,
            in_specs=[
                pl.BlockSpec((None, 1, T_pad), lambda b, i: (b, 0, 0)),
                pl.BlockSpec((None, tile_rows, nc_pad), lambda b, i: (b, i, 0)),
                pl.BlockSpec((None, tile_rows, 4), lambda b, i: (b, i, 0)),
                pl.BlockSpec((None, 4, T_pad), lambda b, i: (b, 0, 0)),
            ],
            out_specs=pl.BlockSpec((None, tile_rows, T_pad), lambda b, i: (b, i, 0)),
        ),
        compiler_params=pltpu.CompilerParams(
            dimension_semantics=("parallel", "parallel"),
            vmem_limit_bytes=vmem_limit),
    )(ids, logits, obox, tbox)

    return c_padded


def _linear_sum_assignment(cost):
    """Hungarian assignment on host. Uses scipy if available."""
    try:
        from scipy.optimize import linear_sum_assignment as lsa
        return lsa(cost)
    except ImportError:
        # TODO(synk): scipy unavailable; greedy fallback is not an exact Hungarian solve.
        cost = np.array(cost, dtype=np.float64, copy=True)
        n_rows, n_cols = cost.shape
        k = min(n_rows, n_cols)
        rows, cols = [], []
        for _ in range(k):
            r, c = np.unravel_index(np.argmin(cost), cost.shape)
            rows.append(r)
            cols.append(c)
            cost[r, :] = np.inf
            cost[:, c] = np.inf
        order = np.argsort(rows)
        return np.asarray(rows)[order], np.asarray(cols)[order]


def uniq_hungarian_matcher_forward(outputs, targets,
                                   cost_class=1.0, cost_bbox=1.0, cost_giou=1.0,
                                   return_cost_matrix=False):
    """JAX/Pallas equivalent of UniqHungarianMatcher.forward (mask=None)."""
    labels = [t["labels"] for t in targets]
    boxes = [t["boxes"] for t in targets]
    sizes = [int(b.shape[0]) for b in boxes]
    t_max = max(sizes) if sizes else 1
    nq = outputs["pred_logits"].shape[1]

    C = compute_cost_matrix(outputs["pred_logits"], outputs["pred_boxes"],
                            labels, boxes,
                            cost_class=cost_class, cost_bbox=cost_bbox,
                            cost_giou=cost_giou)
    # slice the padding away ON DEVICE before the host copy (shrinks D2H)
    C = C[:, :nq, :max(t_max, 1)]
    C = jax.block_until_ready(C)
    C_np = np.asarray(C)

    indices, splits = [], []
    for b in range(len(targets)):
        c_b = C_np[b, :, :sizes[b]]
        splits.append(c_b)
        i, j = _linear_sum_assignment(c_b)
        indices.append((np.asarray(i, dtype=np.int64), np.asarray(j, dtype=np.int64)))
    if return_cost_matrix:
        return indices, splits
    return indices


def _reference_cost_matrix(pred_logits, pred_boxes, tgt_ids, tgt_bbox,
                           cost_class=1.0, cost_bbox=1.0, cost_giou=1.0):
    """Pure-numpy reference of the full (cross-batch) cost matrix."""
    logits = np.asarray(pred_logits, dtype=np.float64)
    bs, nq, nc = logits.shape
    logits = logits.reshape(-1, nc)
    ex = np.exp(logits - logits.max(-1, keepdims=True))
    prob = ex / ex.sum(-1, keepdims=True)
    obox = np.asarray(pred_boxes, dtype=np.float64).reshape(-1, 4)
    tids = np.asarray(tgt_ids)
    tbox = np.asarray(tgt_bbox, dtype=np.float64)

    c_cls = -prob[:, tids]
    c_l1 = np.abs(obox[:, None, :] - tbox[None, :, :]).sum(-1)

    def to_xyxy(b):
        cx, cy, w, h = b[:, 0], b[:, 1], b[:, 2], b[:, 3]
        return np.stack([cx - 0.5 * w, cy - 0.5 * h, cx + 0.5 * w, cy + 0.5 * h], -1)

    a, b = to_xyxy(obox), to_xyxy(tbox)
    area_a = (a[:, 2] - a[:, 0]) * (a[:, 3] - a[:, 1])
    area_b = (b[:, 2] - b[:, 0]) * (b[:, 3] - b[:, 1])
    lt = np.maximum(a[:, None, :2], b[None, :, :2])
    rb = np.minimum(a[:, None, 2:], b[None, :, 2:])
    wh = np.clip(rb - lt, 0, None)
    inter = wh[..., 0] * wh[..., 1]
    union = area_a[:, None] + area_b[None, :] - inter
    iou = inter / union
    lt2 = np.minimum(a[:, None, :2], b[None, :, :2])
    rb2 = np.maximum(a[:, None, 2:], b[None, :, 2:])
    wh2 = np.clip(rb2 - lt2, 0, None)
    earea = wh2[..., 0] * wh2[..., 1]
    giou = iou - (earea - union) / earea

    C = cost_bbox * c_l1 + cost_class * c_cls + cost_giou * (-giou)
    return C.reshape(bs, nq, -1)


if __name__ == "__main__":
    key = jax.random.PRNGKey(0)
    bs, num_queries, num_classes = 2, 8, 32
    sizes = [3, 5]  # number of target boxes per image

    k1, k2, k3, k4 = jax.random.split(key, 4)
    pred_logits = jax.random.normal(k1, (bs, num_queries, num_classes), jnp.float32)
    # cxcywh boxes in (0,1), positive w/h
    pred_boxes = jax.random.uniform(k2, (bs, num_queries, 4), jnp.float32,
                                    minval=0.1, maxval=0.6)
    targets = []
    tkeys = jax.random.split(k3, len(sizes))
    lkeys = jax.random.split(k4, len(sizes))
    for sz, tk, lk in zip(sizes, tkeys, lkeys):
        boxes = jax.random.uniform(tk, (sz, 4), jnp.float32, minval=0.1, maxval=0.6)
        labels = jax.random.randint(lk, (sz,), 0, num_classes)
        targets.append({"labels": labels, "boxes": boxes})

    indices, splits = uniq_hungarian_matcher_forward(
        {"pred_logits": pred_logits, "pred_boxes": pred_boxes}, targets,
        cost_class=1.0, cost_bbox=5.0, cost_giou=2.0,
        return_cost_matrix=True)

    # verify the Pallas per-image cost matrices against a numpy reference
    tgt_ids = jnp.concatenate([t["labels"] for t in targets])
    tgt_bbox = jnp.concatenate([t["boxes"] for t in targets])
    C_ref = _reference_cost_matrix(pred_logits, pred_boxes, tgt_ids, tgt_bbox,
                                   cost_class=1.0, cost_bbox=5.0, cost_giou=2.0)
    offsets = np.cumsum([0] + sizes)
    for b in range(bs):
        ref_b = C_ref[b, :, offsets[b]:offsets[b + 1]]
        assert np.allclose(splits[b], ref_b, atol=1e-4), f"cost matrix mismatch (image {b})"

    for b, (i, j) in enumerate(indices):
        assert len(i) == len(j) == min(num_queries, sizes[b])

    print("KERNEL_OK")
</pallas_src>

<mosaic_0001>
module attributes {stable_mosaic.version = 11 : i64} {
  func.func @_cost_kernel(%arg0: i32, %arg1: i32, %arg2: memref<1x1x128xi32, #tpu.memory_space<vmem>>, %arg3: memref<1x8x128xf32, #tpu.memory_space<vmem>>, %arg4: memref<1x8x4xf32, #tpu.memory_space<vmem>>, %arg5: memref<1x4x128xf32, #tpu.memory_space<vmem>>, %arg6: memref<1x8x128xf32, #tpu.memory_space<vmem>>) attributes {dimension_semantics = [#tpu.dimension_semantics<parallel>, #tpu.dimension_semantics<parallel>], iteration_bounds = array<i64: 2, 1>, scalar_prefetch = 0 : i64, scratch_operands = 0 : i64, tpu.core_type = #tpu.core_type<tc>, window_params = [{transform_indices = @transform_0, window_bounds = array<i64: 1, 1, 128>}, {transform_indices = @transform_1, window_bounds = array<i64: 1, 8, 128>}, {transform_indices = @transform_2, window_bounds = array<i64: 1, 8, 4>}, {transform_indices = @transform_3, window_bounds = array<i64: 1, 4, 128>}, {transform_indices = @transform_4, window_bounds = array<i64: 1, 8, 128>}]} {
    %c0 = arith.constant 0 : index
    %c0_0 = arith.constant 0 : index
    %c0_1 = arith.constant 0 : index
    %0 = vector.load %arg2[%c0, %c0_0, %c0_1] : memref<1x1x128xi32, #tpu.memory_space<vmem>>, vector<1x1x128xi32>
    %1 = vector.shape_cast %0 : vector<1x1x128xi32> to vector<1x128xi32>
    %2 = tpu.iota {dimensions = array<i32: 0>} : vector<128x128xi32>
    %3 = vector.broadcast %1 : vector<1x128xi32> to vector<128x128xi32>
    %4 = arith.cmpi eq, %2, %3 : vector<128x128xi32>
    %cst = arith.constant -1.000000e+00 : f32
    %cst_2 = arith.constant 0.000000e+00 : f32
    %5 = vector.broadcast %cst : f32 to vector<128x128xf32>
    %6 = vector.broadcast %cst_2 : f32 to vector<128x128xf32>
    %7 = arith.select %4, %5, %6 : vector<128x128xi1>, vector<128x128xf32>
    %c0_3 = arith.constant 0 : index
    %c0_4 = arith.constant 0 : index
    %c0_5 = arith.constant 0 : index
    %8 = vector.load %arg3[%c0_3, %c0_4, %c0_5] : memref<1x8x128xf32, #tpu.memory_space<vmem>>, vector<1x8x128xf32>
    %9 = vector.shape_cast %8 : vector<1x8x128xf32> to vector<8x128xf32>
    %cst_6 = arith.constant dense<0xFF800000> : vector<8xf32>
    %10 = vector.multi_reduction <maximumf>, %9, %cst_6 [1] : vector<8x128xf32> to vector<8xf32>
    %11 = vector.shape_cast %10 : vector<8xf32> to vector<8x1xf32>
    %12 = vector.broadcast %11 : vector<8x1xf32> to vector<8x128xf32>
    %13 = arith.subf %9, %12 : vector<8x128xf32>
    %14 = math.exp %13 : vector<8x128xf32>
    %cst_7 = arith.constant dense<0.000000e+00> : vector<8xf32>
    %15 = vector.multi_reduction <add>, %14, %cst_7 [1] : vector<8x128xf32> to vector<8xf32>
    %16 = vector.shape_cast %15 : vector<8xf32> to vector<8x1xf32>
    %17 = tpu.reciprocal %16 : vector<8x1xf32> -> vector<8x1xf32>
    %cst_8 = arith.constant dense<0.000000e+00> : vector<8x128xf32>
    %18 = tpu.matmul %14, %7, %cst_8 {dimension_numbers = #tpu.dot_dimension_numbers<[1], [0], [0], [1], [0, 0, 1, 1], [], []>} : vector<8x128xf32>, vector<128x128xf32>, vector<8x128xf32> -> vector<8x128xf32>
    %c0_9 = arith.constant 0 : index
    %c0_10 = arith.constant 0 : index
    %c0_11 = arith.constant 0 : index
    %19 = vector.load %arg4[%c0_9, %c0_10, %c0_11] : memref<1x8x4xf32, #tpu.memory_space<vmem>>, vector<1x8x1xf32>
    %20 = vector.shape_cast %19 : vector<1x8x1xf32> to vector<8x1xf32>
    %c0_12 = arith.constant 0 : index
    %c0_13 = arith.constant 0 : index
    %c1 = arith.constant 1 : index
    %21 = vector.load %arg4[%c0_12, %c0_13, %c1] : memref<1x8x4xf32, #tpu.memory_space<vmem>>, vector<1x8x1xf32>
    %22 = vector.shape_cast %21 : vector<1x8x1xf32> to vector<8x1xf32>
    %c0_14 = arith.constant 0 : index
    %c0_15 = arith.constant 0 : index
    %c2 = arith.constant 2 : index
    %23 = vector.load %arg4[%c0_14, %c0_15, %c2] : memref<1x8x4xf32, #tpu.memory_space<vmem>>, vector<1x8x1xf32>
    %24 = vector.shape_cast %23 : vector<1x8x1xf32> to vector<8x1xf32>
    %c0_16 = arith.constant 0 : index
    %c0_17 = arith.constant 0 : index
    %c3 = arith.constant 3 : index
    %25 = vector.load %arg4[%c0_16, %c0_17, %c3] : memref<1x8x4xf32, #tpu.memory_space<vmem>>, vector<1x8x1xf32>
    %26 = vector.shape_cast %25 : vector<1x8x1xf32> to vector<8x1xf32>
    %c0_18 = arith.constant 0 : index
    %c0_19 = arith.constant 0 : index
    %c0_20 = arith.constant 0 : index
    %27 = vector.load %arg5[%c0_18, %c0_19, %c0_20] : memref<1x4x128xf32, #tpu.memory_space<vmem>>, vector<1x1x128xf32>
    %28 = vector.shape_cast %27 : vector<1x1x128xf32> to vector<1x128xf32>
    %c0_21 = arith.constant 0 : index
    %c1_22 = arith.constant 1 : index
    %c0_23 = arith.constant 0 : index
    %29 = vector.load %arg5[%c0_21, %c1_22, %c0_23] : memref<1x4x128xf32, #tpu.memory_space<vmem>>, vector<1x1x128xf32>
    %30 = vector.shape_cast %29 : vector<1x1x128xf32> to vector<1x128xf32>
    %c0_24 = arith.constant 0 : index
    %c2_25 = arith.constant 2 : index
    %c0_26 = arith.constant 0 : index
    %31 = vector.load %arg5[%c0_24, %c2_25, %c0_26] : memref<1x4x128xf32, #tpu.memory_space<vmem>>, vector<1x1x128xf32>
    %32 = vector.shape_cast %31 : vector<1x1x128xf32> to vector<1x128xf32>
    %c0_27 = arith.constant 0 : index
    %c3_28 = arith.constant 3 : index
    %c0_29 = arith.constant 0 : index
    %33 = vector.load %arg5[%c0_27, %c3_28, %c0_29] : memref<1x4x128xf32, #tpu.memory_space<vmem>>, vector<1x1x128xf32>
    %34 = vector.shape_cast %33 : vector<1x1x128xf32> to vector<1x128xf32>
    %35 = vector.broadcast %20 : vector<8x1xf32> to vector<8x128xf32>
    %36 = vector.broadcast %28 : vector<1x128xf32> to vector<8x128xf32>
    %37 = arith.subf %35, %36 : vector<8x128xf32>
    %38 = math.absf %37 : vector<8x128xf32>
    %39 = vector.broadcast %22 : vector<8x1xf32> to vector<8x128xf32>
    %40 = vector.broadcast %30 : vector<1x128xf32> to vector<8x128xf32>
    %41 = arith.subf %39, %40 : vector<8x128xf32>
    %42 = math.absf %41 : vector<8x128xf32>
    %43 = arith.addf %38, %42 : vector<8x128xf32>
    %44 = vector.broadcast %24 : vector<8x1xf32> to vector<8x128xf32>
    %45 = vector.broadcast %32 : vector<1x128xf32> to vector<8x128xf32>
    %46 = arith.subf %44, %45 : vector<8x128xf32>
    %47 = math.absf %46 : vector<8x128xf32>
    %48 = arith.addf %43, %47 : vector<8x128xf32>
    %49 = vector.broadcast %26 : vector<8x1xf32> to vector<8x128xf32>
    %50 = vector.broadcast %34 : vector<1x128xf32> to vector<8x128xf32>
    %51 = arith.subf %49, %50 : vector<8x128xf32>
    %52 = math.absf %51 : vector<8x128xf32>
    %53 = arith.addf %48, %52 : vector<8x128xf32>
    %cst_30 = arith.constant 5.000000e-01 : f32
    %54 = vector.broadcast %cst_30 : f32 to vector<8x1xf32>
    %55 = arith.mulf %54, %24 : vector<8x1xf32>
    %56 = arith.subf %20, %55 : vector<8x1xf32>
    %cst_31 = arith.constant 5.000000e-01 : f32
    %57 = vector.broadcast %cst_31 : f32 to vector<8x1xf32>
    %58 = arith.mulf %57, %26 : vector<8x1xf32>
    %59 = arith.subf %22, %58 : vector<8x1xf32>
    %cst_32 = arith.constant 5.000000e-01 : f32
    %60 = vector.broadcast %cst_32 : f32 to vector<8x1xf32>
    %61 = arith.mulf %60, %24 : vector<8x1xf32>
    %62 = arith.addf %20, %61 : vector<8x1xf32>
    %cst_33 = arith.constant 5.000000e-01 : f32
    %63 = vector.broadcast %cst_33 : f32 to vector<8x1xf32>
    %64 = arith.mulf %63, %26 : vector<8x1xf32>
    %65 = arith.addf %22, %64 : vector<8x1xf32>
    %cst_34 = arith.constant 5.000000e-01 : f32
    %66 = vector.broadcast %cst_34 : f32 to vector<1x128xf32>
    %67 = arith.mulf %66, %32 : vector<1x128xf32>
    %68 = arith.subf %28, %67 : vector<1x128xf32>
    %cst_35 = arith.constant 5.000000e-01 : f32
    %69 = vector.broadcast %cst_35 : f32 to vector<1x128xf32>
    %70 = arith.mulf %69, %34 : vector<1x128xf32>
    %71 = arith.subf %30, %70 : vector<1x128xf32>
    %cst_36 = arith.constant 5.000000e-01 : f32
    %72 = vector.broadcast %cst_36 : f32 to vector<1x128xf32>
    %73 = arith.mulf %72, %32 : vector<1x128xf32>
    %74 = arith.addf %28, %73 : vector<1x128xf32>
    %cst_37 = arith.constant 5.000000e-01 : f32
    %75 = vector.broadcast %cst_37 : f32 to vector<1x128xf32>
    %76 = arith.mulf %75, %34 : vector<1x128xf32>
    %77 = arith.addf %30, %76 : vector<1x128xf32>
    %78 = arith.mulf %24, %26 : vector<8x1xf32>
    %79 = arith.mulf %32, %34 : vector<1x128xf32>
    %80 = vector.broadcast %56 : vector<8x1xf32> to vector<8x128xf32>
    %81 = vector.broadcast %68 : vector<1x128xf32> to vector<8x128xf32>
    %82 = arith.maximumf %80, %81 : vector<8x128xf32>
    %83 = vector.broadcast %59 : vector<8x1xf32> to vector<8x128xf32>
    %84 = vector.broadcast %71 : vector<1x128xf32> to vector<8x128xf32>
    %85 = arith.maximumf %83, %84 : vector<8x128xf32>
    %86 = vector.broadcast %62 : vector<8x1xf32> to vector<8x128xf32>
    %87 = vector.broadcast %74 : vector<1x128xf32> to vector<8x128xf32>
    %88 = arith.minimumf %86, %87 : vector<8x128xf32>
    %89 = vector.broadcast %65 : vector<8x1xf32> to vector<8x128xf32>
    %90 = vector.broadcast %77 : vector<1x128xf32> to vector<8x128xf32>
    %91 = arith.minimumf %89, %90 : vector<8x128xf32>
    %92 = vector.broadcast %56 : vector<8x1xf32> to vector<8x128xf32>
    %93 = vector.broadcast %68 : vector<1x128xf32> to vector<8x128xf32>
    %94 = arith.minimumf %92, %93 : vector<8x128xf32>
    %95 = vector.broadcast %59 : vector<8x1xf32> to vector<8x128xf32>
    %96 = vector.broadcast %71 : vector<1x128xf32> to vector<8x128xf32>
    %97 = arith.minimumf %95, %96 : vector<8x128xf32>
    %98 = vector.broadcast %62 : vector<8x1xf32> to vector<8x128xf32>
    %99 = vector.broadcast %74 : vector<1x128xf32> to vector<8x128xf32>
    %100 = arith.maximumf %98, %99 : vector<8x128xf32>
    %101 = vector.broadcast %65 : vector<8x1xf32> to vector<8x128xf32>
    %102 = vector.broadcast %77 : vector<1x128xf32> to vector<8x128xf32>
    %103 = arith.maximumf %101, %102 : vector<8x128xf32>
    %104 = arith.subf %88, %82 : vector<8x128xf32>
    %cst_38 = arith.constant 0.000000e+00 : f32
    %105 = vector.broadcast %cst_38 : f32 to vector<8x128xf32>
    %106 = arith.maximumf %104, %105 : vector<8x128xf32>
    %107 = arith.subf %91, %85 : vector<8x128xf32>
    %cst_39 = arith.constant 0.000000e+00 : f32
    %108 = vector.broadcast %cst_39 : f32 to vector<8x128xf32>
    %109 = arith.maximumf %107, %108 : vector<8x128xf32>
    %110 = arith.mulf %106, %109 : vector<8x128xf32>
    %111 = vector.broadcast %78 : vector<8x1xf32> to vector<8x128xf32>
    %112 = vector.broadcast %79 : vector<1x128xf32> to vector<8x128xf32>
    %113 = arith.addf %111, %112 : vector<8x128xf32>
    %114 = arith.subf %113, %110 : vector<8x128xf32>
    %cst_40 = arith.constant 9.99999996E-13 : f32
    %115 = vector.broadcast %cst_40 : f32 to vector<8x128xf32>
    %116 = arith.maximumf %114, %115 : vector<8x128xf32>
    %117 = tpu.reciprocal %116 {approx = true} : vector<8x128xf32> -> vector<8x128xf32>
    %118 = arith.mulf %116, %117 : vector<8x128xf32>
    %cst_41 = arith.constant 2.000000e+00 : f32
    %119 = vector.broadcast %cst_41 : f32 to vector<8x128xf32>
    %120 = arith.subf %119, %118 : vector<8x128xf32>
    %121 = arith.mulf %117, %120 : vector<8x128xf32>
    %122 = arith.mulf %110, %121 : vector<8x128xf32>
    %123 = arith.subf %100, %94 : vector<8x128xf32>
    %cst_42 = arith.constant 0.000000e+00 : f32
    %124 = vector.broadcast %cst_42 : f32 to vector<8x128xf32>
    %125 = arith.maximumf %123, %124 : vector<8x128xf32>
    %126 = arith.subf %103, %97 : vector<8x128xf32>
    %cst_43 = arith.constant 0.000000e+00 : f32
    %127 = vector.broadcast %cst_43 : f32 to vector<8x128xf32>
    %128 = arith.maximumf %126, %127 : vector<8x128xf32>
    %129 = arith.mulf %125, %128 : vector<8x128xf32>
    %130 = arith.subf %129, %114 : vector<8x128xf32>
    %cst_44 = arith.constant 9.99999996E-13 : f32
    %131 = vector.broadcast %cst_44 : f32 to vector<8x128xf32>
    %132 = arith.maximumf %129, %131 : vector<8x128xf32>
    %133 = tpu.reciprocal %132 {approx = true} : vector<8x128xf32> -> vector<8x128xf32>
    %134 = arith.mulf %132, %133 : vector<8x128xf32>
    %cst_45 = arith.constant 2.000000e+00 : f32
    %135 = vector.broadcast %cst_45 : f32 to vector<8x128xf32>
    %136 = arith.subf %135, %134 : vector<8x128xf32>
    %137 = arith.mulf %133, %136 : vector<8x128xf32>
    %138 = arith.mulf %130, %137 : vector<8x128xf32>
    %139 = arith.subf %122, %138 : vector<8x128xf32>
    %cst_46 = arith.constant 5.000000e+00 : f32
    %140 = vector.broadcast %cst_46 : f32 to vector<8x128xf32>
    %141 = arith.mulf %140, %53 : vector<8x128xf32>
    %142 = vector.broadcast %17 : vector<8x1xf32> to vector<8x128xf32>
    %143 = arith.mulf %18, %142 : vector<8x128xf32>
    %144 = arith.addf %141, %143 : vector<8x128xf32>
    %cst_47 = arith.constant 2.000000e+00 : f32
    %145 = vector.broadcast %cst_47 : f32 to vector<8x128xf32>
    %146 = arith.mulf %145, %139 : vector<8x128xf32>
    %147 = arith.subf %144, %146 : vector<8x128xf32>
    %c0_48 = arith.constant 0 : index
    %c0_49 = arith.constant 0 : index
    %c0_50 = arith.constant 0 : index
    %148 = vector.load %arg6[%c0_48, %c0_49, %c0_50] : memref<1x8x128xf32, #tpu.memory_space<vmem>>, vector<1x8x128xf32>
    %149 = vector.shape_cast %148 : vector<1x8x128xf32> to vector<8x128xf32>
    %150 = vector.shape_cast %147 : vector<8x128xf32> to vector<1x8x128xf32>
    tpu.vector_store %arg6[%c0_48, %c0_49, %c0_50], %150 {strides = array<i32>} : memref<1x8x128xf32, #tpu.memory_space<vmem>>, vector<1x8x128xf32>,
    return
  }
  func.func @transform_0(%arg0: i32, %arg1: i32) -> (i32, i32, i32) {
    %c0_i32 = arith.constant 0 : i32
    %c0_i32_0 = arith.constant 0 : i32
    %c0_i32_1 = arith.constant 0 : i32
    return %arg0, %c0_i32, %c0_i32_0 : i32, i32, i32
  }
  func.func @transform_1(%arg0: i32, %arg1: i32) -> (i32, i32, i32) {
    %c0_i32 = arith.constant 0 : i32
    %c0_i32_0 = arith.constant 0 : i32
    return %arg0, %arg1, %c0_i32 : i32, i32, i32
  }
  func.func @transform_2(%arg0: i32, %arg1: i32) -> (i32, i32, i32) {
    %c0_i32 = arith.constant 0 : i32
    %c0_i32_0 = arith.constant 0 : i32
    return %arg0, %arg1, %c0_i32 : i32, i32, i32
  }
  func.func @transform_3(%arg0: i32, %arg1: i32) -> (i32, i32, i32) {
    %c0_i32 = arith.constant 0 : i32
    %c0_i32_0 = arith.constant 0 : i32
    %c0_i32_1 = arith.constant 0 : i32
    return %arg0, %c0_i32, %c0_i32_0 : i32, i32, i32
  }
  func.func @transform_4(%arg0: i32, %arg1: i32) -> (i32, i32, i32) {
    %c0_i32 = arith.constant 0 : i32
    %c0_i32_0 = arith.constant 0 : i32
    return %arg0, %arg1, %c0_i32 : i32, i32, i32
  }
}

</mosaic_0001>

<bundles_post_ra>
// kernel: tpu_custom_call.1
= control target key start
LH: loop header
LB: loop body
LE: loop exit
PB: predicated region body
PF: predicated region fallthrough
CT: control target
= control target key end

     0   :  { %9 = vsyncpa [#allocation3], 0  ;;  %s1271_s0 = inlined_call_operand.hbm [shape: s32[2,1,128], index: 0, kind: input, shape index: {}]   ;;  %s1272_s1 = inlined_call_operand.vmem [shape: f32[2,8,128], index: 1, kind: input, shape index: {}]   ;;  %s1273_s2 = inlined_call_operand.vmem [shape: f32[2,8,4], index: 2, kind: input, shape index: {}]   ;;  %s1274_s3 = inlined_call_operand.vmem [shape: f32[2,4,128], index: 3, kind: input, shape index: {}]   ;;  %s1275_s4 = inlined_call_operand.hbm [shape: f32[2,8,128], index: 4, kind: output, shape index: {}]  }
   0x1   :  { %11 = vsyncpa [#allocation3 + $0x1], 0 }
   0x2   :  { %12 = vsyncpa [#allocation4], 0 }
   0x3   :  { %14 = vsyncpa [#allocation4 + $0x1], 0  ;;  %s1031_s15 = smov 0   ;;  %s1033_s16 = smov 0  }
   0x4   :  { %s1035_s17 = smov 0   ;;  %s1037_s18 = smov 0  }
   0x5   :  { %s1039_s19 = smov 0   ;;  %s1041_s20 = smov 0  }
   0x6 LB: > { %s713_s21 = sadd.s32 4294967295, %s993_s20   ;;  %s714_s22 = sadd.s32 4294967294, %s993_s20   ;;  %s993_s20 = sphi %s1041_s20, %s20_s20   ;;  %s989_s19 = sphi %s1039_s19, %s1287_s19   ;;  %s985_s18 = sphi %s1037_s18, %s1286_s18   ;;  %s981_s17 = sphi %s1035_s17, %s1285_s17   ;;  %s977_s16 = sphi %s1033_s16, %s1284_s16   ;;  %s973_s15 = sphi %s1031_s15, %s1283_s15  }
   0x7   : > { %s32_s23 = sadd.s32 1, %s989_s19  ;;  %s39_s24 = sadd.s32 1, %s981_s17 }
   0x8   : > { %p34_p0 = scmp.ge.s32.totalorder %s32_s23, 2  ;;  %p46_p1 = scmp.ne.s32.totalorder %s981_s17, %s977_s16 }
   0x9   : > { %p47_p2 = scmp.eq.s32.totalorder %s993_s20, 0  ;;  %p52_p3 = scmp.ne.s32.totalorder %s977_s16, %s973_s15 }
   0xa   : > { %s1289_s23 = smov (%p34_p0, %s32_s23), 0  ;;  %p53_p5 = scmp.eq.s32.totalorder %s713_s21, 0 }
   0xb   : > { %p1072_p4 = por %p47_p2, %p46_p1  ;;  %s36_s26 = ssub.s32 %s989_s19, %s1289_s23 }
   0xc   : > { %p160_p6 = scmp.eq.s32.totalorder %s713_s21, 1  ;;  %p37_p7 = scmp.eq.s32.totalorder %s36_s26, 0 }
   0xd   : > { %p1078_p8 = por %p53_p5, %p52_p3  ;;  %p166_p10 = scmp.eq.s32.totalorder %s714_s22, 1 }
   0xe   : > { %p1082_p9 = por %p160_p6, %p46_p1  ;;  %p808_p13 = scmp.lt.s32.totalorder %s993_s20, 2 }
   0xf   : > { %s1087_s29 = scalar_select %p37_p7, %s981_s17, %s39_s24  }
  0x10   : > { %p1089_p11 = por %p166_p10, %p52_p3  ;;  %s186_s5 = sand.u32 1, %s981_s17  }
  0x11   : > { %s717_s6 = sshll.u32 %s989_s19, 4  ;;  %s189_s7 = scalar_lea.vmem [#allocation2], %s186_s5 }
  0x12   : > { %s1279_s30 = scalar_select %p1089_p11, 1, 0 }
  0x13   : > { %s196_s8 = sshll.u32 %s189_s7, 4  ;;  %s194_s11 = scalar_lea.hbm %s1271_s0, %s717_s6  ;;  %s197_s8 = int_to_ptr.vmem [resolvable:$true] %s196_s8 }
  0x14   : > { %p1102_p0 = pnand %p808_p13, %p1072_p4  ;;  %p718_p1 = scmp.ge.s32.totalorder %s993_s20, 1 }
  0x15   : > { %p228_p2 = scmp.lt.s32.totalorder %s993_s20, 3  ;;  %s187_s13 = scalar_lea.sflag [#allocation3], %s186_s5 }
  0x16   : > { %p887_p3 = pneg %p1102_p0  ;;  %s898_s14 = scalar_lea.vmem %s197_s8, 16 }
  0x17   : > { %p899_p5 = scmp.ne.s32.totalorder %s197_s8, %s898_s14  ;;  %s995_s21 = smov [#allocation2]  }
  0x18   : > { %s903_s22 = sshll.u32 %s995_s21, 4  ;;  %s904_s22 = int_to_ptr.vmem [resolvable:$false] %s903_s22 }
  0x19   : > { %p901_p6 = pnand %p899_p5, %p887_p3  ;;  %s905_s24 = scalar_lea.vmem %s904_s22, 32 }
  0x1a   : > { %p906_p10 = scmp.lt.s32.totalorder %s197_s8, %s904_s22  ;;  %p907_p12 = scmp.lt.s32.totalorder %s905_s24, %s898_s14 }
  0x1b   : > { %p902_p7 = pneg %p901_p6 }
  0x1c   : > { %p908_p4 = por %p907_p12, %p906_p10 }
  0x1e   : > { %p909_p13 = pnand %p908_p4, %p902_p7 }
  0x20   : > { %912 = shalt.err (!%p909_p13)
}
  0x21   : > { %803 = dma.hbm_to_vmem [thread:$0]  (!%p1102_p0), %s194_s11, 16, %s197_s8, %s187_s13  }
  0x22   : > { %p229_p11 = pnand %p718_p1, %p228_p2 }
  0x23   : > { %s1117_s25 = sand.u32 (!%p229_p11), 1, %s977_s16  }
  0x24   : > { %232 = sbr.rel (%p229_p11) target bundleno = 417 (0x1a1), region = 36  ;;  %s235_s26 = scalar_lea.sflag (!%p229_p11), [#allocation3], %s1117_s25 }
  0x25   : > { %s237_s5 = scalar_lea.vmem (!%p229_p11), [#allocation2], %s1117_s25 }
  0x29   : > { %964 = dma.done.wait (%p1078_p8), %s235_s26, 16  }
  0x2a   : > { %966 = vsyncadd (%p1078_p8), %s235_s26, 4294967280  ;;  %p279_p12 = scmp.lt.s32.totalorder %s985_s18, 1  ;;  %v298_v0 = vlaneseq  ;;  %v996_v1 = vmov 0.0   ;;  %v1146_v8 = vld [vmem:[%s237_s5] ss:$0 sm:$0xff]  ;;  %s997_s13 = smov 127  }
  0x2b   : > { %761 = vmatprep.subr.mxu0 %v996_v1  ;;  %v998_v10 = vmov -1.0   ;;  %v999_v15 = vmov 2   ;;  %v1000_v19 = vmov 0   ;;  %s1001_s14 = smov 126   ;;  %vm1002_vm15 = vmmov 0   ;;  %s719_s5 = sshll.u32 %s1117_s25, 3 }
  0x2c   : > { %s1128_s6 = scalar_select %p279_p12, %s985_s18, 1  ;;  %v1130_v2 = vshrl.u32 %v298_v0, 7  ;;  %867 = vset.pattern.permute.xlu1 %v999_v15  ;;  %872 = vset.pattern.permute.xlu0 %v1000_v19  ;;  %v1003_v25 = vmov 1   ;;  %v1004_v26 = vmov 3  }
  0x2d   : > { %793 = vmatprep.mubr.msk.f32.mxu0 %vm1002_vm15, %v996_v1  ;;  %s581_s11 = scalar_lea.sflag [#allocation4], %s1117_s25 }
  0x2e   : > { %s720_s7 = sshll.u32 %s1128_s6, 3  ;;  %v314_v3 = vadd.s32 120, %v1130_v2  ;;  %v313_v4 = vadd.s32 112, %v1130_v2  ;;  %v312_v5 = vadd.s32 104, %v1130_v2  ;;  %v311_v9 = vadd.s32 96, %v1130_v2  ;;  %s722_s21 = sshll.u32 %s1128_s6, 2 }
  0x2f   : > { %s285_s9 = scalar_lea.vmem %s1272_s1, %s720_s7  ;;  %s292_s12 = scalar_lea.vmem %s1273_s2, %s720_s7  ;;  %v310_v11 = vadd.s32 88, %v1130_v2  ;;  %v309_v12 = vadd.s32 80, %v1130_v2  ;;  %v308_v13 = vadd.s32 72, %v1130_v2  ;;  %v307_v14 = vadd.s32 64, %v1130_v2 }
  0x30   : > { %v1142_v6 = vld [vmem:[%s285_s9] sm:$0xff]  ;;  %vm334_vm0 = vcmp.eq.s32.totalorder %v314_v3, %v1146_v8  ;;  %vm333_vm1 = vcmp.eq.s32.totalorder %v313_v4, %v1146_v8  ;;  %vm332_vm2 = vcmp.eq.s32.totalorder %v312_v5, %v1146_v8  ;;  %vm331_vm3 = vcmp.eq.s32.totalorder %v311_v9, %v1146_v8  ;;  %s296_s26 = scalar_lea.vmem %s1274_s3, %s722_s21  ;;  %s741_s6 = sshll.u32 %s985_s18, 7 }
  0x31   : > { %v1144_v7 = vld [vmem:[%s292_s12] sm:$0xff]  ;;  %352 = vmax.xlane.f32.xlu0 %v1142_v6  ;;  %762 = vmatpush3.msk.msra.mxu0 %vm334_vm0, %v998_v10  ;;  %vm330_vm4 = vcmp.eq.s32.totalorder %v310_v11, %v1146_v8  ;;  %vm329_vm5 = vcmp.eq.s32.totalorder %v309_v12, %v1146_v8  ;;  %vm328_vm6 = vcmp.eq.s32.totalorder %v308_v13, %v1146_v8  ;;  %v306_v16 = vadd.s32 56, %v1130_v2  ;;  %s278_s7 = scalar_lea.vmem [#allocation5], %s719_s5  ;;  %s593_s10 = scalar_lea.hbm %s1275_s4, %s741_s6 }
  0x32   : > { %492 = vrot.lane.b32.xlu1 %v1144_v7, %s997_s13  ;;  %763 = vmatprep.subr.mxu0 %v996_v1  ;;  %vm327_vm7 = vcmp.eq.s32.totalorder %v307_v14, %v1146_v8  ;;  %v305_v17 = vadd.s32 48, %v1130_v2  ;;  %v304_v18 = vadd.s32 40, %v1130_v2  ;;  %v303_v20 = vadd.s32 32, %v1130_v2  ;;  %v1224_v39 = vld [vmem:[%s296_s26 + $0x3] sm:$0x1]  ;;  %s595_s8 = sshll.u32 %s278_s7, 4  ;;  %s596_s8 = int_to_ptr.vmem [resolvable:$true] %s595_s8 }
  0x33   : > { %764 = vmatpush3.msk.msra.mxu0 %vm333_vm1, %v998_v10  ;;  %vm326_vm8 = vcmp.eq.s32.totalorder %v306_v16, %v1146_v8  ;;  %v479_v21 = vmul.f32 0.5, %v1144_v7  ;;  %v302_v22 = vadd.s32 24, %v1130_v2  ;;  %v301_v23 = vadd.s32 16, %v1130_v2  ;;  %v433_v41 = vld [vmem:[%s296_s26 + $0x2] sm:$0x1]  ;;  %s913_s12 = scalar_lea.vmem %s596_s8, 128 }
  0x34   : > { %765 = vmatprep.subr.mxu0 %v996_v1  ;;  %vm325_vm9 = vcmp.eq.s32.totalorder %v305_v17, %v1146_v8  ;;  %vm324_vm10 = vcmp.eq.s32.totalorder %v304_v18, %v1146_v8  ;;  %vm323_vm11 = vcmp.eq.s32.totalorder %v303_v20, %v1146_v8  ;;  %v300_v24 = vadd.s32 8, %v1130_v2  ;;  %v432_v42 = vld [vmem:[%s296_s26 + $0x1] sm:$0x1]  ;;  %v431_v46 = vld [vmem:[%s296_s26] sm:$0x1]  ;;  %p914_p8 = scmp.ne.s32.totalorder %s596_s8, %s913_s12  ;;  %s1005_s13 = smov [#allocation5]  }
  0x35   : > { %766 = vmatpush3.msk.msra.mxu0 %vm332_vm2, %v998_v10  ;;  %vm322_vm12 = vcmp.eq.s32.totalorder %v302_v22, %v1146_v8  ;;  %vm321_vm13 = vcmp.eq.s32.totalorder %v301_v23, %v1146_v8  ;;  %vm319_vm0 = vcmp.eq.s32.totalorder %v1130_v2, %v1146_v8  ;;  %v488_v40 = vmul.f32 0.5, %v1224_v39 }
  0x36   : > { %767 = vmatprep.subr.mxu0 %v996_v1  ;;  %vm320_vm14 = vcmp.eq.s32.totalorder %v300_v24, %v1146_v8  ;;  %v486_v44 = vmul.f32 0.5, %v433_v41  ;;  %v442_v47 = vsub.s32 0, %v1130_v2  ;;  %v496_v61 = vmul.f32 %v1224_v39, %v433_v41  ;;  %p915_p11 = pnand %p914_p8, %p1082_p9 }
  0x37   : > { %768 = vmatpush3.msk.msra.mxu0 %vm331_vm3, %v998_v10  ;;  %v491_v45 = vadd.f32 %v488_v40, %v432_v42  ;;  %v489_v48 = vsub.f32 %v432_v42, %v488_v40 }
  0x38   : > { %769 = vmatprep.subr.mxu0 %v996_v1  ;;  %v490_v49 = vadd.f32 %v486_v44, %v431_v46  ;;  %v487_v50 = vsub.f32 %v431_v46, %v486_v44  ;;  %v552_v3 = vrot.slane %v496_v61, %v442_v47  ;;  %v443_v18 = vrot.slane %v431_v46, %v442_v47  ;;  %p916_p0 = pneg %p915_p11 }
  0x39   : > { %770 = vmatpush3.msk.msra.mxu0 %vm330_vm4, %v998_v10  ;;  %v533_v51 = vrot.slane %v491_v45, %v442_v47  ;;  %v514_v53 = vrot.slane %v489_v48, %v442_v47  ;;  %v464_v24 = vrot.slane %v433_v41, %v442_v47 }
  0x3a   : > { %771 = vmatprep.subr.mxu0 %v996_v1  ;;  %v524_v54 = vrot.slane %v490_v49, %v442_v47  ;;  %v505_v55 = vrot.slane %v487_v50, %v442_v47 }
  0x3b   : > { %772 = vmatpush3.msk.msra.mxu0 %vm329_vm5, %v998_v10 }
  0x3c   : > { %773 = vmatprep.subr.mxu0 %v996_v1 }
  0x3d   : > { %774 = vmatpush3.msk.msra.mxu0 %vm328_vm6, %v998_v10 }
  0x3e   : > { %775 = vmatprep.subr.mxu0 %v996_v1 }
  0x3f   : > { %776 = vmatpush3.msk.msra.mxu0 %vm327_vm7, %v998_v10 }
  0x40   : > { %777 = vmatprep.subr.mxu0 %v996_v1 }
  0x41   : > { %778 = vmatpush3.msk.msra.mxu0 %vm326_vm8, %v998_v10 }
  0x42   : > { %779 = vmatprep.subr.mxu0 %v996_v1 }
  0x43   : > { %780 = vmatpush3.msk.msra.mxu0 %vm325_vm9, %v998_v10 }
  0x44   : > { %781 = vmatprep.subr.mxu0 %v996_v1 }
  0x45   : > { %782 = vmatpush3.msk.msra.mxu0 %vm324_vm10, %v998_v10 }
  0x46   : > { %783 = vmatprep.subr.mxu0 %v996_v1 }
  0x47   : > { %481 = vrot.lane.b32.xlu0 %v479_v21, %s1001_s14  ;;  %784 = vmatpush3.msk.msra.mxu0 %vm323_vm11, %v998_v10  ;;  %s917_s14 = sshll.u32 %s1005_s13, 4  ;;  %s918_s14 = int_to_ptr.vmem [resolvable:$false] %s917_s14 }
  0x48   : > { %785 = vmatprep.subr.mxu0 %v996_v1  ;;  %s919_s18 = scalar_lea.vmem %s918_s14, 256  ;;  %p920_p1 = scmp.lt.s32.totalorder %s596_s8, %s918_s14 }
  0x49   : > { %786 = vmatpush3.msk.msra.mxu0 %vm322_vm12, %v998_v10  ;;  %p921_p2 = scmp.lt.s32.totalorder %s919_s18, %s913_s12 }
  0x4a   : > { %787 = vmatprep.subr.mxu0 %v996_v1 }
  0x4b   : > { %437 = vperm.xlu0 %872, %v1144_v7   ;;  %788 = vmatpush3.msk.msra.mxu0 %vm321_vm13, %v998_v10  ;;  %p922_p3 = por %p921_p2, %p920_p1 }
  0x4c   : > { %789 = vmatprep.subr.mxu0 %v996_v1 }
  0x4d   : > { %790 = vmatpush3.msk.msra.mxu0 %vm320_vm14, %v998_v10  ;;  %p923_p5 = pnand %p922_p3, %p916_p0 }
  0x4e   : > { %791 = vmatprep.subr.mxu0 %v996_v1 }
  0x4f   : > { %873 = vset.pattern.permute.xlu0 %v1003_v25  ;;  %792 = vmatpush3.msk.msra.mxu0 %vm319_vm0, %v998_v10 }
  0x50   : > { %447 = vperm.xlu0 %873, %v1144_v7  }
  0x54   : > { %874 = vset.pattern.permute.xlu0 %v999_v15 }
  0x55   : > { %458 = vperm.xlu0 %874, %v1144_v7  }
  0x59   : > { %875 = vset.pattern.permute.xlu0 %v1004_v26 }
  0x5a   : > { %469 = vperm.xlu0 %875, %v1144_v7  }
  0x5e   : > { %876 = vset.pattern.permute.xlu0 %v999_v15 }
  0xa4   : > { %v493_v27 = vpop.permute.xlu1 %492 }
  0xa5   : > { %v495_v28 = vmul.f32 %v493_v27, %v1144_v7  ;;  %v475_v27 = vrot.slane %v1224_v39, %v442_v47 }
  0xa7   : > { %546 = vperm.xlu1 %867, %v495_v28  }
  0xab   : > { %868 = vset.pattern.permute.xlu1 %v1000_v19 }
  0xba   : > { %v353_v29 = vpop.xlane.xlu0 %352 }
  0xbb   : > { %v354_v30 = vsub.f32 %v1142_v6, %v353_v29 }
  0xbd   : > { %v355_v31 = vmul.f32 1.442695, %v354_v30 }
  0xbe   : > { %v482_v32 = vpop.permute.xlu0 %481 }
  0xbf   : > { %877 = vpow2.f32 %v355_v31  ;;  %v484_v33 = vsub.f32 %v1144_v7, %v482_v32  ;;  %v485_v34 = vadd.f32 %v482_v32, %v1144_v7 }
  0xc1   : > { %499 = vperm.xlu1 %868, %v484_v33  }
  0xc5   : > { %869 = vset.pattern.permute.xlu1 %v1003_v25 }
  0xc6   : > { %508 = vperm.xlu1 %869, %v484_v33   ;;  %v438_v16 = vpop.permute.xlu0 %437 }
  0xc7   : > { %v444_v22 = vsub.f32 %v438_v16, %v443_v18 }
  0xc9   : > { %v445_v30 = vand.u32 2147483647, %v444_v22 }
  0xca   : > { %870 = vset.pattern.permute.xlu1 %v1000_v19  ;;  %v453_v19 = vrot.slane %v432_v42, %v442_v47 }
  0xcb   : > { %518 = vperm.xlu1 %870, %v485_v34   ;;  %v448_v17 = vpop.permute.xlu0 %447 }
  0xcc   : > { %v878_v35 = vpop.eup %877  ;;  %v454_v23 = vsub.f32 %v448_v17, %v453_v19 }
  0xcd   : > { %794 = vmatmul.mubr.f32.vlgmr.msra.gmra.mxu0 %v878_v35 }
  0xce   : > { %v455_v31 = vand.u32 2147483647, %v454_v23 }
  0xcf   : > { %871 = vset.pattern.permute.xlu1 %v1003_v25 }
  0xd0   : > { %527 = vperm.xlu1 %871, %v485_v34   ;;  %v459_v21 = vpop.permute.xlu0 %458 }
  0xd1   : > { %v465_v32 = vsub.f32 %v459_v21, %v464_v24 }
  0xd5   : > { %v470_v33 = vpop.permute.xlu0 %469 }
  0xf4   : > { %357 = vadd.xlane.f32.xlu1 %v878_v35 }
 0x122   : > { %v547_v36 = vpop.permute.xlu1 %546 }
 0x123   : > { %v553_v9 = vadd.f32 %v552_v3, %v547_v36  ;;  %v456_v36 = vadd.f32 %v455_v31, %v445_v30 }
 0x13c   : > { %v500_v37 = vpop.permute.xlu1 %499 }
 0x13d   : > { %v506_v59 = vmax.f32 %v500_v37, %v505_v55  ;;  %v535_v4 = vmin.f32 %v500_v37, %v505_v55  ;;  %v466_v37 = vand.u32 2147483647, %v465_v32 }
 0x13f   : > { %v467_v41 = vadd.f32 %v466_v37, %v456_v36 }
 0x141   : > { %v509_v38 = vpop.permute.xlu1 %508 }
 0x142   : > { %v515_v57 = vmax.f32 %v509_v38, %v514_v53  ;;  %v536_v0 = vmin.f32 %v509_v38, %v514_v53  ;;  %v476_v38 = vsub.f32 %v470_v33, %v475_v27 }
 0x144   : > { %v477_v42 = vand.u32 2147483647, %v476_v38 }
 0x146   : > { %v519_v43 = vpop.permute.xlu1 %518  ;;  %v478_v45 = vadd.f32 %v477_v42, %v467_v41 }
 0x147   : > { %v525_v58 = vmin.f32 %v519_v43, %v524_v54  ;;  %v537_v1 = vmax.f32 %v519_v43, %v524_v54 }
 0x148   : > { %v574_v50 = vmul.f32 5.0, %v478_v45 }
 0x149   : > { %v539_v62 = vsub.f32 %v525_v58, %v506_v59  ;;  %v561_v7 = vsub.f32 %v537_v1, %v535_v4 }
 0x14b   : > { %v528_v52 = vpop.permute.xlu1 %527  ;;  %v540_v5 = vmax.f32 %v539_v62, 0.0  ;;  %v562_v11 = vmax.f32 %v561_v7, 0.0 }
 0x14c   : > { %v534_v56 = vmin.f32 %v528_v52, %v533_v51  ;;  %v538_v63 = vmax.f32 %v528_v52, %v533_v51 }
 0x14e   : > { %v541_v60 = vsub.f32 %v534_v56, %v515_v57  ;;  %v563_v6 = vsub.f32 %v538_v63, %v536_v0 }
 0x150   : > { %v542_v2 = vmax.f32 %v541_v60, 0.0  ;;  %v564_v10 = vmax.f32 %v563_v6, 0.0 }
 0x152   : > { %v543_v8 = vmul.f32 %v542_v2, %v540_v5  ;;  %v565_v13 = vmul.f32 %v564_v10, %v562_v11 }
 0x154   : > { %v554_v12 = vsub.f32 %v553_v9, %v543_v8  ;;  %v567_v15 = vmax.f32 %v565_v13, 1e-12 }
 0x156   : > { %v555_v14 = vmax.f32 %v554_v12, 1e-12  ;;  %v566_v39 = vsub.f32 %v565_v13, %v554_v12 }
 0x158   : > { %879 = vrcp.f32 %v555_v14 }
 0x159   : > { %881 = vrcp.f32 %v567_v15 }
 0x165   : > { %v880_v20 = vpop.eup %879 }
 0x166   : > { %v882_v25 = vpop.eup %881  ;;  %v557_v26 = vmul.f32 %v880_v20, %v555_v14 }
 0x167   : > { %v569_v29 = vmul.f32 %v882_v25, %v567_v15 }
 0x168   : > { %v558_v34 = vsub.f32 2.0, %v557_v26 }
 0x169   : > { %v570_v35 = vsub.f32 2.0, %v569_v29 }
 0x16a   : > { %v559_v40 = vmul.f32 %v880_v20, %v558_v34 }
 0x16b   : > { %v571_v43 = vmul.f32 %v882_v25, %v570_v35 }
 0x16c   : > { %v560_v44 = vmul.f32 %v559_v40, %v543_v8 }
 0x16d   : > { %v572_v46 = vmul.f32 %v571_v43, %v566_v39 }
 0x16f   : > { %v573_v47 = vsub.f32 %v560_v44, %v572_v46 }
 0x171   : > { %v577_v54 = vmul.f32 2.0, %v573_v47 }
 0x17d   : > { %v358_v28 = vpop.xlane.xlu1 %357 }
 0x17e   : > { %883 = vrcp.f32 %v358_v28 }
 0x18b   : > { %v884_v48 = vpop.eup %883 }
 0x18d   : > { %v426_v49 = vpop.f32.mrf.mxu0 }
 0x18e   : > { %v575_v51 = vmul.f32 %v884_v48, %v426_v49 }
 0x18f   : > { %v795_v52 = vpop.f32.mrf.mxu0 }
 0x190   : > { %v576_v53 = vadd.f32 %v575_v51, %v574_v50 }
 0x192   : > { %v578_v55 = vsub.f32 %v576_v53, %v577_v54 }
 0x194   : > { %579 = vst [vmem:[%s278_s7] sm:$0xff] %v578_v55 }
 0x195   : > { %926 = shalt.err (!%p923_p5)
}
 0x196   : > { %s927_s21 = scalar_lea.hbm %s593_s10, 128  ;;  %s931_s24 = scalar_lea.hbm %s1275_s4, 256 }
 0x197   : > { %p928_p6 = scmp.ne.s32.totalorder %s593_s10, %s927_s21  ;;  %p932_p4 = scmp.lt.s32.totalorder %s593_s10, %s1275_s4 }
 0x198   : > { %p933_p13 = scmp.lt.s32.totalorder %s931_s24, %s927_s21 }
 0x199   : > { %p929_p7 = pnand %p928_p6, %p1082_p9 }
 0x19a   : > { %p934_p12 = por %p933_p13, %p932_p4 }
 0x19b   : > { %p930_p10 = pneg %p929_p7 }
 0x19d   : > { %p935_p8 = pnand %p934_p12, %p930_p10 }
 0x19f   : > { %938 = shalt.err (!%p935_p8)
}
 0x1a0   : > { %798 = dma.vmem_to_hbm [thread:$0]  (%p1082_p9), %s596_s8, 128, %s593_s10, %s581_s11  }
 0x1a1 PF: > { %s607_s6 = sand.u32 1, %s973_s15   ;;  %p1281_p11 = scmp.ne.s32.totalorder %s1279_s30, 0 }
 0x1a2   : > { %p1282_p0 = scmp.ge.s32.totalorder %s993_s20, 2  ;;  %s608_s7 = scalar_lea.sflag [#allocation4], %s607_s6 }
 0x1a4   : > { %p805_p1 = pnand %p1282_p0, %p1281_p11 }
 0x1a6   : > { %p806_p2 = pneg %p805_p1 }
 0x1a8   : > { %968 = dma.done.wait (%p806_p2), %s608_s7, 128  }
 0x1a9   : > { %970 = vsyncadd (%p806_p2), %s608_s7, 4294967168  ;;  %s20_s20 = sadd.s32 1, %s993_s20   ;;  %s1283_s15 = smov %s977_s16 }
 0x1aa   : > { %p17_p3 = scmp.ge.s32.totalorder %s20_s20, 4   ;;  %s1284_s16 = smov %s981_s17 }
 0x1ab   : > { %s1285_s17 = smov %s1087_s29  ;;  %s1286_s18 = smov %s989_s19 }
 0x1ac   : > { %s1287_s19 = smov %s1289_s23  ;;  %19 = sbr.rel (!%p17_p3) target bundleno = 6 (0x6), region = 90 }
 0x1b1   :  { %613 = vsyncpa [#allocation3], 1 }
 0x1b2   :  { %615 = vsyncpa [#allocation3 + $0x1], 1 }
 0x1b3   :  { %616 = vsyncpa [#allocation4], 1 }
 0x1b4   :  { %618 = vsyncpa [#allocation4 + $0x1], 1 }

</bundles_post_ra>
